<compile_context>
chip_gen: v6e
topology: v6e:2x2x1
jax: 0.10.0
libtpu: 0.0.40
codegen_flags: <defaults>
</compile_context>

<pallas_src>
import jax
import jax.numpy as jnp
from jax.experimental import pallas as pl
from jax.experimental.pallas import tpu as pltpu

K_IN = 1022
H1 = 10
H2 = 10
OUT = 2


def mlp_kernel(x_ref, w1_ref, b1_ref, w2_ref, b2_ref, w3_ref, b3_ref, o_ref):
    # Cast the x tile to the layer-1 weight dtype (no-op for f32; for bf16 it
    # puts the big matmul on the MXU's native path). Accumulation stays f32.
    x = x_ref[...].astype(w1_ref.dtype)

    # layer1 + ReLU   ((TB, 1022) @ (1022, 10) on the MXU)
    h1 = jnp.dot(x, w1_ref[...], preferred_element_type=jnp.float32) + b1_ref[...]
    h1 = jnp.maximum(h1, 0.0)

    # layer2 + ReLU
    h2 = jnp.dot(h1, w2_ref[...], preferred_element_type=jnp.float32) + b2_ref[...]
    h2 = jnp.maximum(h2, 0.0)

    # layer3
    logits = jnp.dot(h2, w3_ref[...], preferred_element_type=jnp.float32) + b3_ref[...]

    # log_softmax over the feature axis (max-shifted, numerically safe)
    m = jnp.max(logits, axis=1, keepdims=True)
    shifted = logits - m
    lse = jnp.log(jnp.sum(jnp.exp(shifted), axis=1, keepdims=True))
    o_ref[...] = (shifted - lse).astype(o_ref.dtype)


def _round_up(n, m):
    return ((n + m - 1) // m) * m


def prepare_params(params, compute_dtype=jnp.float32):
    """One-time conversion of PyTorch-convention (out, in) weights to the
    kernel layout (in, out) with row-vector biases. Hoisted out of the forward
    path so no per-call transpose/pad ops hit HBM."""
    return {
        "w1t": jnp.asarray(params["w1"].T, compute_dtype),      # (1022, 10)
        "b1": jnp.asarray(params["b1"], jnp.float32).reshape(1, H1),
        "w2t": jnp.asarray(params["w2"].T, jnp.float32),         # (10, 10)
        "b2": jnp.asarray(params["b2"], jnp.float32).reshape(1, H2),
        "w3t": jnp.asarray(params["w3"].T, jnp.float32),          # (10, 2)
        "b3": jnp.asarray(params["b3"], jnp.float32).reshape(1, OUT),
    }


def mlp_forward(x, prepared, *, tb=2048):
    """x: [B, 1022]. prepared: output of prepare_params()."""
    B = x.shape[0]
    assert x.shape[1] == K_IN

    # Batch tile: multiple of 8 sublanes, no larger than needed for B.
    TB = min(_round_up(tb, 8), _round_up(B, 8))
    grid = (pl.cdiv(B, TB),)   # ragged last block handled by Pallas (masked writeback)

    full = lambda i: (0, 0)    # weights/biases: same block every step (VMEM-resident)

    # Honest (unpadded) cost hint for XLA scheduling.
    flops = 2 * B * (K_IN * H1 + H1 * H2 + H2 * OUT)
    bytes_accessed = (x.dtype.itemsize * B * K_IN
                      + 4 * B * OUT
                      + prepared["w1t"].dtype.itemsize * K_IN * H1
                      + 4 * (H1 * H2 + H2 * OUT + H1 + H2 + OUT))
    cost = pl.CostEstimate(flops=flops,
                           bytes_accessed=bytes_accessed,
                           transcendentals=B * (OUT + 1))

    return pl.pallas_call(
        mlp_kernel,
        out_shape=jax.ShapeDtypeStruct((B, OUT), jnp.float32),
        grid=grid,
        in_specs=[
            pl.BlockSpec((TB, K_IN), lambda i: (i, 0)),   # x: streamed / pipelined
            pl.BlockSpec((K_IN, H1), full),               # w1^T
            pl.BlockSpec((1, H1), full),                  # b1
            pl.BlockSpec((H1, H2), full),                 # w2^T
            pl.BlockSpec((1, H2), full),                  # b2
            pl.BlockSpec((H2, OUT), full),                # w3^T
            pl.BlockSpec((1, OUT), full),                 # b3
        ],
        out_specs=pl.BlockSpec((TB, OUT), lambda i: (i, 0)),
        compiler_params=pltpu.CompilerParams(
            dimension_semantics=("parallel",),            # shard batch across TCs (v7x)
            vmem_limit_bytes=40 * 1024 * 1024,            # safe on v5e/v6e/v7x
        ),
        cost_estimate=cost,
    )(x, prepared["w1t"], prepared["b1"], prepared["w2t"], prepared["b2"],
      prepared["w3t"], prepared["b3"])


def init_params(key):
    """Deterministic init mirroring nn.Linear's U(-1/sqrt(fan_in), 1/sqrt(fan_in))."""
    ks = jax.random.split(key, 6)

    def linear_init(kw, kb, fan_in, fan_out):
        bound = 1.0 / jnp.sqrt(jnp.float32(fan_in))
        w = jax.random.uniform(kw, (fan_out, fan_in), jnp.float32, -bound, bound)
        b = jax.random.uniform(kb, (fan_out,), jnp.float32, -bound, bound)
        return w, b

    w1, b1 = linear_init(ks[0], ks[1], K_IN, H1)
    w2, b2 = linear_init(ks[2], ks[3], H1, H2)
    w3, b3 = linear_init(ks[4], ks[5], H2, OUT)
    return {"w1": w1, "b1": b1, "w2": w2, "b2": b2, "w3": w3, "b3": b3}


def reference_forward(x, p):
    h1 = jnp.maximum(x @ p["w1"].T + p["b1"], 0.0)
    h2 = jnp.maximum(h1 @ p["w2"].T + p["b2"], 0.0)
    logits = h2 @ p["w3"].T + p["b3"]
    return jax.nn.log_softmax(logits, axis=1)


if __name__ == "__main__":
    key = jax.random.PRNGKey(0)
    kx, kp = jax.random.split(key)

    B = 8
    x = jax.random.normal(kx, (B, K_IN), dtype=jnp.float32)
    params = init_params(kp)
    prepared = prepare_params(params)   # one-time weight prep (hoisted)

    out = jax.block_until_ready(mlp_forward(x, prepared))
    ref = reference_forward(x, params)
    assert out.shape == (B, OUT)
    assert jnp.allclose(out, ref, atol=1e-5, rtol=1e-5)

    # Ragged batch (not a multiple of 8 / TB): exercises masked boundary writes.
    B2 = 13
    x2 = jax.random.normal(jax.random.PRNGKey(3), (B2, K_IN), dtype=jnp.float32)
    out2 = jax.block_until_ready(mlp_forward(x2, prepared))
    assert out2.shape == (B2, OUT)
    assert jnp.allclose(out2, reference_forward(x2, params), atol=1e-5, rtol=1e-5)

    # Optional bf16 layer-1 path (v5e MXU lever); looser tolerance by design.
    prepared_bf16 = prepare_params(params, compute_dtype=jnp.bfloat16)
    out3 = jax.block_until_ready(mlp_forward(x, prepared_bf16))
    assert out3.shape == (B, OUT)
    assert jnp.allclose(out3, ref, atol=1e-1, rtol=1e-1)

    print("KERNEL_OK")
</pallas_src>

<mosaic_0001>
module attributes {stable_mosaic.version = 11 : i64} {
  func.func @mlp_kernel(%arg0: i32, %arg1: memref<8x1022xf32, #tpu.memory_space<vmem>>, %arg2: memref<1022x10xf32, #tpu.memory_space<vmem>>, %arg3: memref<1x10xf32, #tpu.memory_space<vmem>>, %arg4: memref<10x10xf32, #tpu.memory_space<vmem>>, %arg5: memref<1x10xf32, #tpu.memory_space<vmem>>, %arg6: memref<10x2xf32, #tpu.memory_space<vmem>>, %arg7: memref<1x2xf32, #tpu.memory_space<vmem>>, %arg8: memref<8x2xf32, #tpu.memory_space<vmem>>) attributes {dimension_semantics = [#tpu.dimension_semantics<parallel>], iteration_bounds = array<i64: 1>, scalar_prefetch = 0 : i64, scratch_operands = 0 : i64, tpu.core_type = #tpu.core_type<tc>, window_params = [{transform_indices = @transform_0, window_bounds = array<i64: 8, 1022>}, {pipeline_mode = #tpu.pipeline_mode<synchronous>, transform_indices = @transform_1, window_bounds = array<i64: 1022, 10>}, {pipeline_mode = #tpu.pipeline_mode<synchronous>, transform_indices = @transform_2, window_bounds = array<i64: 1, 10>}, {pipeline_mode = #tpu.pipeline_mode<synchronous>, transform_indices = @transform_3, window_bounds = array<i64: 10, 10>}, {pipeline_mode = #tpu.pipeline_mode<synchronous>, transform_indices = @transform_4, window_bounds = array<i64: 1, 10>}, {pipeline_mode = #tpu.pipeline_mode<synchronous>, transform_indices = @transform_5, window_bounds = array<i64: 10, 2>}, {pipeline_mode = #tpu.pipeline_mode<synchronous>, transform_indices = @transform_6, window_bounds = array<i64: 1, 2>}, {transform_indices = @transform_7, window_bounds = array<i64: 8, 2>}]} {
    %c0 = arith.constant 0 : index
    %c0_0 = arith.constant 0 : index
    %0 = vector.load %arg1[%c0, %c0_0] : memref<8x1022xf32, #tpu.memory_space<vmem>>, vector<8x1022xf32>
    %c0_1 = arith.constant 0 : index
    %c0_2 = arith.constant 0 : index
    %1 = vector.load %arg2[%c0_1, %c0_2] : memref<1022x10xf32, #tpu.memory_space<vmem>>, vector<1022x10xf32>
    %cst = arith.constant dense<0.000000e+00> : vector<8x10xf32>
    %2 = tpu.matmul %0, %1, %cst {dimension_numbers = #tpu.dot_dimension_numbers<[1], [0], [0], [1], [0, 0, 1, 1], [], []>} : vector<8x1022xf32>, vector<1022x10xf32>, vector<8x10xf32> -> vector<8x10xf32>
    %c0_3 = arith.constant 0 : index
    %c0_4 = arith.constant 0 : index
    %3 = vector.load %arg3[%c0_3, %c0_4] : memref<1x10xf32, #tpu.memory_space<vmem>>, vector<1x10xf32>
    %4 = vector.broadcast %3 : vector<1x10xf32> to vector<8x10xf32>
    %5 = arith.addf %2, %4 : vector<8x10xf32>
    %cst_5 = arith.constant 0.000000e+00 : f32
    %6 = vector.broadcast %cst_5 : f32 to vector<8x10xf32>
    %7 = arith.maximumf %5, %6 : vector<8x10xf32>
    %c0_6 = arith.constant 0 : index
    %c0_7 = arith.constant 0 : index
    %8 = vector.load %arg4[%c0_6, %c0_7] : memref<10x10xf32, #tpu.memory_space<vmem>>, vector<10x10xf32>
    %cst_8 = arith.constant dense<0.000000e+00> : vector<8x10xf32>
    %9 = tpu.matmul %7, %8, %cst_8 {dimension_numbers = #tpu.dot_dimension_numbers<[1], [0], [0], [1], [0, 0, 1, 1], [], []>} : vector<8x10xf32>, vector<10x10xf32>, vector<8x10xf32> -> vector<8x10xf32>
    %c0_9 = arith.constant 0 : index
    %c0_10 = arith.constant 0 : index
    %10 = vector.load %arg5[%c0_9, %c0_10] : memref<1x10xf32, #tpu.memory_space<vmem>>, vector<1x10xf32>
    %11 = vector.broadcast %10 : vector<1x10xf32> to vector<8x10xf32>
    %12 = arith.addf %9, %11 : vector<8x10xf32>
    %cst_11 = arith.constant 0.000000e+00 : f32
    %13 = vector.broadcast %cst_11 : f32 to vector<8x10xf32>
    %14 = arith.maximumf %12, %13 : vector<8x10xf32>
    %c0_12 = arith.constant 0 : index
    %c0_13 = arith.constant 0 : index
    %15 = vector.load %arg6[%c0_12, %c0_13] : memref<10x2xf32, #tpu.memory_space<vmem>>, vector<10x2xf32>
    %cst_14 = arith.constant dense<0.000000e+00> : vector<8x2xf32>
    %16 = tpu.matmul %14, %15, %cst_14 {dimension_numbers = #tpu.dot_dimension_numbers<[1], [0], [0], [1], [0, 0, 1, 1], [], []>} : vector<8x10xf32>, vector<10x2xf32>, vector<8x2xf32> -> vector<8x2xf32>
    %c0_15 = arith.constant 0 : index
    %c0_16 = arith.constant 0 : index
    %17 = vector.load %arg7[%c0_15, %c0_16] : memref<1x2xf32, #tpu.memory_space<vmem>>, vector<1x2xf32>
    %18 = vector.broadcast %17 : vector<1x2xf32> to vector<8x2xf32>
    %19 = arith.addf %16, %18 : vector<8x2xf32>
    %cst_17 = arith.constant dense<0xFF800000> : vector<8xf32>
    %20 = vector.multi_reduction <maximumf>, %19, %cst_17 [1] : vector<8x2xf32> to vector<8xf32>
    %21 = vector.shape_cast %20 : vector<8xf32> to vector<8x1xf32>
    %22 = vector.broadcast %21 : vector<8x1xf32> to vector<8x2xf32>
    %23 = arith.subf %19, %22 : vector<8x2xf32>
    %24 = math.exp %23 : vector<8x2xf32>
    %cst_18 = arith.constant dense<0.000000e+00> : vector<8xf32>
    %25 = vector.multi_reduction <add>, %24, %cst_18 [1] : vector<8x2xf32> to vector<8xf32>
    %26 = vector.shape_cast %25 : vector<8xf32> to vector<8x1xf32>
    %27 = math.log %26 : vector<8x1xf32>
    %28 = vector.broadcast %27 : vector<8x1xf32> to vector<8x2xf32>
    %29 = arith.subf %23, %28 : vector<8x2xf32>
    %c0_19 = arith.constant 0 : index
    %c0_20 = arith.constant 0 : index
    %30 = vector.load %arg8[%c0_19, %c0_20] : memref<8x2xf32, #tpu.memory_space<vmem>>, vector<8x2xf32>
    tpu.vector_store %arg8[%c0_19, %c0_20], %29 {strides = array<i32>} : memref<8x2xf32, #tpu.memory_space<vmem>>, vector<8x2xf32>,
    return
  }
  func.func @transform_0(%arg0: i32) -> (i32, i32) {
    %c0_i32 = arith.constant 0 : i32
    %c0_i32_0 = arith.constant 0 : i32
    return %arg0, %c0_i32 : i32, i32
  }
  func.func @transform_1(%arg0: i32) -> (i32, i32) {
    %c0_i32 = arith.constant 0 : i32
    %c0_i32_0 = arith.constant 0 : i32
    %c0_i32_1 = arith.constant 0 : i32
    return %c0_i32, %c0_i32_0 : i32, i32
  }
  func.func @transform_2(%arg0: i32) -> (i32, i32) {
    %c0_i32 = arith.constant 0 : i32
    %c0_i32_0 = arith.constant 0 : i32
    %c0_i32_1 = arith.constant 0 : i32
    return %c0_i32, %c0_i32_0 : i32, i32
  }
  func.func @transform_3(%arg0: i32) -> (i32, i32) {
    %c0_i32 = arith.constant 0 : i32
    %c0_i32_0 = arith.constant 0 : i32
    %c0_i32_1 = arith.constant 0 : i32
    return %c0_i32, %c0_i32_0 : i32, i32
  }
  func.func @transform_4(%arg0: i32) -> (i32, i32) {
    %c0_i32 = arith.constant 0 : i32
    %c0_i32_0 = arith.constant 0 : i32
    %c0_i32_1 = arith.constant 0 : i32
    return %c0_i32, %c0_i32_0 : i32, i32
  }
  func.func @transform_5(%arg0: i32) -> (i32, i32) {
    %c0_i32 = arith.constant 0 : i32
    %c0_i32_0 = arith.constant 0 : i32
    %c0_i32_1 = arith.constant 0 : i32
    return %c0_i32, %c0_i32_0 : i32, i32
  }
  func.func @transform_6(%arg0: i32) -> (i32, i32) {
    %c0_i32 = arith.constant 0 : i32
    %c0_i32_0 = arith.constant 0 : i32
    %c0_i32_1 = arith.constant 0 : i32
    return %c0_i32, %c0_i32_0 : i32, i32
  }
  func.func @transform_7(%arg0: i32) -> (i32, i32) {
    %c0_i32 = arith.constant 0 : i32
    %c0_i32_0 = arith.constant 0 : i32
    return %arg0, %c0_i32 : i32, i32
  }
}

</mosaic_0001>

<bundles_post_ra>
// kernel: tpu_custom_call.1
= control target key start
LH: loop header
LB: loop body
LE: loop exit
PB: predicated region body
PF: predicated region fallthrough
CT: control target
= control target key end

     0   :  { %vm173_vm0 = vcmask 1045504   ;;  %vm169_vm1 = vcmask 1031168   ;;  %vm471_vm2 = vcmask 1041408   ;;  %vm825_vm3 = vmmov 0   ;;  %s1303_s1 = inlined_call_operand.vmem [shape: f32[1022,10], index: 1, kind: input, shape index: {}]   ;;  %s1304_s0 = inlined_call_operand.vmem [shape: f32[8,1022], index: 0, kind: input, shape index: {}]   ;;  %s1305_s3 = inlined_call_operand.vmem [shape: f32[10,10], index: 3, kind: input, shape index: {}]   ;;  %s1306_s2 = inlined_call_operand.vmem [shape: f32[1,10], index: 2, kind: input, shape index: {}]   ;;  %s1307_s5 = inlined_call_operand.vmem [shape: f32[10,2], index: 5, kind: input, shape index: {}]   ;;  %s1308_s4 = inlined_call_operand.vmem [shape: f32[1,10], index: 4, kind: input, shape index: {}]   ;;  %s1309_s6 = inlined_call_operand.vmem [shape: f32[1,2], index: 6, kind: input, shape index: {}]   ;;  %s1310_s7 = inlined_call_operand.vmem [shape: f32[8,2], index: 7, kind: output, shape index: {}]  }
   0x1   :  { %v65_v0 = vld [vmem:[%s1303_s1 + $0xf8] sm:$0xff]  ;;  %v64_v4 = vld [vmem:[%s1303_s1 + $0xf0] sm:$0xff]  ;;  %v63_v8 = vld [vmem:[%s1303_s1 + $0xe8] sm:$0xff]  ;;  %vm467_vm4 = vcmask 80896   ;;  %vm631_vm5 = vcmask 15360  }
   0x2   :  { %v97_v1 = vld [vmem:[%s1303_s1 + $0x1f8] sm:$0xff]  ;;  %658 = vmatprep.subr.mxu0 %v65_v0  ;;  %v96_v5 = vld [vmem:[%s1303_s1 + $0x1f0] sm:$0xff]  ;;  %v95_v9 = vld [vmem:[%s1303_s1 + $0x1e8] sm:$0xff] }
   0x3   :  { %v49_v2 = vld [vmem:[%s1303_s1 + $0x78] sm:$0xff]  ;;  %693 = vmatprep.subr.mxu1 %v97_v1  ;;  %v48_v6 = vld [vmem:[%s1303_s1 + $0x70] sm:$0xff]  ;;  %v47_v10 = vld [vmem:[%s1303_s1 + $0x68] sm:$0xff] }
   0x4   :  { %v81_v3 = vld [vmem:[%s1303_s1 + $0x178] sm:$0xff]  ;;  %659 = vmatpush3.msra.mxu0 %v49_v2  ;;  %v80_v7 = vld [vmem:[%s1303_s1 + $0x170] sm:$0xff]  ;;  %v79_v11 = vld [vmem:[%s1303_s1 + $0x168] sm:$0xff] }
   0x5   :  { %694 = vmatpush3.msra.mxu1 %v81_v3  ;;  %660 = vmatprep.subr.mxu0 %v64_v4  ;;  %v62_v12 = vld [vmem:[%s1303_s1 + $0xe0] sm:$0xff]  ;;  %v61_v16 = vld [vmem:[%s1303_s1 + $0xd8] sm:$0xff]  ;;  %v60_v20 = vld [vmem:[%s1303_s1 + $0xd0] sm:$0xff] }
   0x6   :  { %695 = vmatprep.subr.mxu1 %v96_v5  ;;  %661 = vmatpush3.msra.mxu0 %v48_v6  ;;  %v94_v13 = vld [vmem:[%s1303_s1 + $0x1e0] sm:$0xff]  ;;  %v93_v17 = vld [vmem:[%s1303_s1 + $0x1d8] sm:$0xff]  ;;  %v92_v21 = vld [vmem:[%s1303_s1 + $0x1d0] sm:$0xff] }
   0x7   :  { %696 = vmatpush3.msra.mxu1 %v80_v7  ;;  %662 = vmatprep.subr.mxu0 %v63_v8  ;;  %v46_v14 = vld [vmem:[%s1303_s1 + $0x60] sm:$0xff]  ;;  %v45_v18 = vld [vmem:[%s1303_s1 + $0x58] sm:$0xff]  ;;  %v44_v22 = vld [vmem:[%s1303_s1 + $0x50] sm:$0xff] }
   0x8   :  { %697 = vmatprep.subr.mxu1 %v95_v9  ;;  %v78_v15 = vld [vmem:[%s1303_s1 + $0x160] sm:$0xff]  ;;  %663 = vmatpush3.msra.mxu0 %v47_v10  ;;  %v77_v19 = vld [vmem:[%s1303_s1 + $0x158] sm:$0xff]  ;;  %v76_v23 = vld [vmem:[%s1303_s1 + $0x150] sm:$0xff] }
   0x9   :  { %698 = vmatpush3.msra.mxu1 %v79_v11  ;;  %664 = vmatprep.subr.mxu0 %v62_v12  ;;  %v59_v24 = vld [vmem:[%s1303_s1 + $0xc8] sm:$0xff]  ;;  %v58_v28 = vld [vmem:[%s1303_s1 + $0xc0] sm:$0xff]  ;;  %v57_v32 = vld [vmem:[%s1303_s1 + $0xb8] sm:$0xff] }
   0xa   :  { %699 = vmatprep.subr.mxu1 %v94_v13  ;;  %665 = vmatpush3.msra.mxu0 %v46_v14  ;;  %v91_v25 = vld [vmem:[%s1303_s1 + $0x1c8] sm:$0xff]  ;;  %v90_v29 = vld [vmem:[%s1303_s1 + $0x1c0] sm:$0xff]  ;;  %v89_v33 = vld [vmem:[%s1303_s1 + $0x1b8] sm:$0xff] }
   0xb   :  { %700 = vmatpush3.msra.mxu1 %v78_v15  ;;  %666 = vmatprep.subr.mxu0 %v61_v16  ;;  %v43_v26 = vld [vmem:[%s1303_s1 + $0x48] sm:$0xff]  ;;  %v42_v30 = vld [vmem:[%s1303_s1 + $0x40] sm:$0xff]  ;;  %v41_v34 = vld [vmem:[%s1303_s1 + $0x38] sm:$0xff] }
   0xc   :  { %701 = vmatprep.subr.mxu1 %v93_v17  ;;  %667 = vmatpush3.msra.mxu0 %v45_v18  ;;  %v75_v27 = vld [vmem:[%s1303_s1 + $0x148] sm:$0xff]  ;;  %v74_v31 = vld [vmem:[%s1303_s1 + $0x140] sm:$0xff]  ;;  %v73_v35 = vld [vmem:[%s1303_s1 + $0x138] sm:$0xff] }
   0xd   :  { %702 = vmatpush3.msra.mxu1 %v77_v19  ;;  %668 = vmatprep.subr.mxu0 %v60_v20  ;;  %v56_v36 = vld [vmem:[%s1303_s1 + $0xb0] sm:$0xff]  ;;  %v55_v40 = vld [vmem:[%s1303_s1 + $0xa8] sm:$0xff]  ;;  %v54_v44 = vld [vmem:[%s1303_s1 + $0xa0] sm:$0xff] }
   0xe   :  { %703 = vmatprep.subr.mxu1 %v92_v21  ;;  %669 = vmatpush3.msra.mxu0 %v44_v22  ;;  %v88_v37 = vld [vmem:[%s1303_s1 + $0x1b0] sm:$0xff]  ;;  %v87_v41 = vld [vmem:[%s1303_s1 + $0x1a8] sm:$0xff]  ;;  %v86_v45 = vld [vmem:[%s1303_s1 + $0x1a0] sm:$0xff] }
   0xf   :  { %704 = vmatpush3.msra.mxu1 %v76_v23  ;;  %670 = vmatprep.subr.mxu0 %v59_v24  ;;  %v40_v38 = vld [vmem:[%s1303_s1 + $0x30] sm:$0xff]  ;;  %v39_v42 = vld [vmem:[%s1303_s1 + $0x28] sm:$0xff]  ;;  %v38_v46 = vld [vmem:[%s1303_s1 + $0x20] sm:$0xff] }
  0x10   :  { %705 = vmatprep.subr.mxu1 %v91_v25  ;;  %671 = vmatpush3.msra.mxu0 %v43_v26  ;;  %v72_v39 = vld [vmem:[%s1303_s1 + $0x130] sm:$0xff]  ;;  %v71_v43 = vld [vmem:[%s1303_s1 + $0x128] sm:$0xff]  ;;  %v70_v47 = vld [vmem:[%s1303_s1 + $0x120] sm:$0xff] }
  0x11   :  { %706 = vmatpush3.msra.mxu1 %v75_v27  ;;  %672 = vmatprep.subr.mxu0 %v58_v28  ;;  %v53_v48 = vld [vmem:[%s1303_s1 + $0x98] sm:$0xff]  ;;  %v52_v52 = vld [vmem:[%s1303_s1 + $0x90] sm:$0xff]  ;;  %v51_v56 = vld [vmem:[%s1303_s1 + $0x88] sm:$0xff] }
  0x12   :  { %707 = vmatprep.subr.mxu1 %v90_v29  ;;  %673 = vmatpush3.msra.mxu0 %v42_v30  ;;  %v85_v49 = vld [vmem:[%s1303_s1 + $0x198] sm:$0xff]  ;;  %v84_v53 = vld [vmem:[%s1303_s1 + $0x190] sm:$0xff]  ;;  %v83_v57 = vld [vmem:[%s1303_s1 + $0x188] sm:$0xff] }
  0x13   :  { %708 = vmatpush3.msra.mxu1 %v74_v31  ;;  %674 = vmatprep.subr.mxu0 %v57_v32  ;;  %v37_v50 = vld [vmem:[%s1303_s1 + $0x18] sm:$0xff]  ;;  %v36_v54 = vld [vmem:[%s1303_s1 + $0x10] sm:$0xff]  ;;  %v35_v58 = vld [vmem:[%s1303_s1 + $0x8] sm:$0xff] }
  0x14   :  { %709 = vmatprep.subr.mxu1 %v89_v33  ;;  %675 = vmatpush3.msra.mxu0 %v41_v34  ;;  %v69_v51 = vld [vmem:[%s1303_s1 + $0x118] sm:$0xff]  ;;  %v68_v55 = vld [vmem:[%s1303_s1 + $0x110] sm:$0xff]  ;;  %v67_v59 = vld [vmem:[%s1303_s1 + $0x108] sm:$0xff] }
  0x15   :  { %710 = vmatpush3.msra.mxu1 %v73_v35  ;;  %676 = vmatprep.subr.mxu0 %v56_v36  ;;  %v50_v60 = vld [vmem:[%s1303_s1 + $0x80] sm:$0xff]  ;;  %v27_v63 = vld [vmem:[%s1304_s0 + $0x8] sm:$0xff]  ;;  %v29_v2 = vld [vmem:[%s1304_s0 + $0x18] sm:$0xff] }
  0x16   :  { %711 = vmatprep.subr.mxu1 %v88_v37  ;;  %677 = vmatpush3.msra.mxu0 %v40_v38  ;;  %v82_v61 = vld [vmem:[%s1303_s1 + $0x180] sm:$0xff]  ;;  %v129_v3 = vld [vmem:[%s1303_s1 + $0x2f8] sm:$0xff]  ;;  %v28_v5 = vld [vmem:[%s1304_s0 + $0x10] sm:$0xff] }
  0x17   :  { %712 = vmatpush3.msra.mxu1 %v72_v39  ;;  %678 = vmatprep.subr.mxu0 %v55_v40  ;;  %v34_v62 = vld [vmem:[%s1303_s1] sm:$0xff]  ;;  %v161_v4 = vld [vmem:[%s1303_s1 + $0x3f8] sm:$0x3f]  ;;  %v128_v8 = vld [vmem:[%s1303_s1 + $0x2f0] sm:$0xff] }
  0x18   :  { %713 = vmatprep.subr.mxu1 %v87_v41  ;;  %679 = vmatpush3.msra.mxu0 %v39_v42  ;;  %v66_v0 = vld [vmem:[%s1303_s1 + $0x100] sm:$0xff]  ;;  %v113_v6 = vld [vmem:[%s1303_s1 + $0x278] sm:$0xff]  ;;  %v160_v9 = vld [vmem:[%s1303_s1 + $0x3f0] sm:$0xff] }
  0x19   :  { %714 = vmatpush3.msra.mxu1 %v71_v43  ;;  %680 = vmatprep.subr.mxu0 %v54_v44  ;;  %v26_v1 = vld [vmem:[%s1304_s0] sm:$0xff]  ;;  %v145_v7 = vld [vmem:[%s1303_s1 + $0x378] sm:$0xff]  ;;  %v112_v10 = vld [vmem:[%s1303_s1 + $0x270] sm:$0xff] }
  0x1a   :  { %715 = vmatprep.subr.mxu1 %v86_v45  ;;  %681 = vmatpush3.msra.mxu0 %v38_v46  ;;  %v144_v11 = vld [vmem:[%s1303_s1 + $0x370] sm:$0xff]  ;;  %v127_v12 = vld [vmem:[%s1303_s1 + $0x2e8] sm:$0xff]  ;;  %v126_v16 = vld [vmem:[%s1303_s1 + $0x2e0] sm:$0xff] }
  0x1b   :  { %716 = vmatpush3.msra.mxu1 %v70_v47  ;;  %682 = vmatprep.subr.mxu0 %v53_v48  ;;  %v159_v13 = vld [vmem:[%s1303_s1 + $0x3e8] sm:$0xff]  ;;  %v158_v17 = vld [vmem:[%s1303_s1 + $0x3e0] sm:$0xff]  ;;  %v125_v20 = vld [vmem:[%s1303_s1 + $0x2d8] sm:$0xff] }
  0x1c   :  { %717 = vmatprep.subr.mxu1 %v85_v49  ;;  %683 = vmatpush3.msra.mxu0 %v37_v50  ;;  %v111_v14 = vld [vmem:[%s1303_s1 + $0x268] sm:$0xff]  ;;  %v110_v18 = vld [vmem:[%s1303_s1 + $0x260] sm:$0xff]  ;;  %v157_v21 = vld [vmem:[%s1303_s1 + $0x3d8] sm:$0xff] }
  0x1d   :  { %718 = vmatpush3.msra.mxu1 %v69_v51  ;;  %684 = vmatprep.subr.mxu0 %v52_v52  ;;  %v143_v15 = vld [vmem:[%s1303_s1 + $0x368] sm:$0xff]  ;;  %v142_v19 = vld [vmem:[%s1303_s1 + $0x360] sm:$0xff]  ;;  %v109_v22 = vld [vmem:[%s1303_s1 + $0x258] sm:$0xff] }
  0x1e   :  { %719 = vmatprep.subr.mxu1 %v84_v53  ;;  %685 = vmatpush3.msra.mxu0 %v36_v54  ;;  %v141_v23 = vld [vmem:[%s1303_s1 + $0x358] sm:$0xff]  ;;  %v124_v24 = vld [vmem:[%s1303_s1 + $0x2d0] sm:$0xff]  ;;  %v123_v28 = vld [vmem:[%s1303_s1 + $0x2c8] sm:$0xff] }
  0x1f   :  { %720 = vmatpush3.msra.mxu1 %v68_v55  ;;  %686 = vmatprep.subr.mxu0 %v51_v56  ;;  %v156_v25 = vld [vmem:[%s1303_s1 + $0x3d0] sm:$0xff]  ;;  %v155_v29 = vld [vmem:[%s1303_s1 + $0x3c8] sm:$0xff]  ;;  %v122_v32 = vld [vmem:[%s1303_s1 + $0x2c0] sm:$0xff] }
  0x20   :  { %721 = vmatprep.subr.mxu1 %v83_v57  ;;  %687 = vmatpush3.msra.mxu0 %v35_v58  ;;  %v108_v26 = vld [vmem:[%s1303_s1 + $0x250] sm:$0xff]  ;;  %v107_v30 = vld [vmem:[%s1303_s1 + $0x248] sm:$0xff]  ;;  %v154_v33 = vld [vmem:[%s1303_s1 + $0x3c0] sm:$0xff] }
  0x21   :  { %722 = vmatpush3.msra.mxu1 %v67_v59  ;;  %688 = vmatprep.subr.mxu0 %v50_v60  ;;  %v140_v27 = vld [vmem:[%s1303_s1 + $0x350] sm:$0xff]  ;;  %v139_v31 = vld [vmem:[%s1303_s1 + $0x348] sm:$0xff]  ;;  %v106_v34 = vld [vmem:[%s1303_s1 + $0x240] sm:$0xff] }
  0x22   :  { %723 = vmatprep.subr.mxu1 %v82_v61  ;;  %689 = vmatpush3.msra.mxu0 %v34_v62  ;;  %v138_v35 = vld [vmem:[%s1303_s1 + $0x340] sm:$0xff]  ;;  %v121_v36 = vld [vmem:[%s1303_s1 + $0x2b8] sm:$0xff]  ;;  %v120_v40 = vld [vmem:[%s1303_s1 + $0x2b0] sm:$0xff] }
  0x23   :  { %241 = vmatprep.mubr.f32.mxu0 %v27_v63  ;;  %724 = vmatpush3.msra.mxu1 %v66_v0  ;;  %v153_v37 = vld [vmem:[%s1303_s1 + $0x3b8] sm:$0xff]  ;;  %v152_v41 = vld [vmem:[%s1303_s1 + $0x3b0] sm:$0xff]  ;;  %v119_v44 = vld [vmem:[%s1303_s1 + $0x2a8] sm:$0xff] }
  0x24   :  { %242 = vmatmul.mubr.f32.vlgmr.msra.gmra.mxu0 %v26_v1  ;;  %311 = vmatprep.mubr.f32.mxu1 %v29_v2  ;;  %v105_v38 = vld [vmem:[%s1303_s1 + $0x238] sm:$0xff]  ;;  %v104_v42 = vld [vmem:[%s1303_s1 + $0x230] sm:$0xff]  ;;  %v151_v45 = vld [vmem:[%s1303_s1 + $0x3a8] sm:$0xff] }
  0x25   :  { %728 = vmatprep.subr.mxu0 %v129_v3  ;;  %763 = vmatprep.subr.msk.mxu1 %vm173_vm0, %v161_v4  ;;  %v137_v39 = vld [vmem:[%s1303_s1 + $0x338] sm:$0xff]  ;;  %v136_v43 = vld [vmem:[%s1303_s1 + $0x330] sm:$0xff]  ;;  %v103_v46 = vld [vmem:[%s1303_s1 + $0x228] sm:$0xff] }
  0x26   :  { %312 = vmatmul.mubr.f32.vlgmr.msra.gmra.mxu1 %v28_v5  ;;  %729 = vmatpush3.msra.mxu0 %v113_v6  ;;  %v135_v47 = vld [vmem:[%s1303_s1 + $0x328] sm:$0xff]  ;;  %v118_v48 = vld [vmem:[%s1303_s1 + $0x2a0] sm:$0xff]  ;;  %v117_v52 = vld [vmem:[%s1303_s1 + $0x298] sm:$0xff] }
  0x27   :  { %764 = vmatpush3.msra.mxu1 %v145_v7  ;;  %730 = vmatprep.subr.mxu0 %v128_v8  ;;  %v150_v49 = vld [vmem:[%s1303_s1 + $0x3a0] sm:$0xff]  ;;  %v149_v53 = vld [vmem:[%s1303_s1 + $0x398] sm:$0xff]  ;;  %v116_v56 = vld [vmem:[%s1303_s1 + $0x290] sm:$0xff]  ;;  %v824_v8 = vmov 0.0  }
  0x28   :  { %765 = vmatprep.subr.mxu1 %v160_v9  ;;  %731 = vmatpush3.msra.mxu0 %v112_v10  ;;  %v102_v50 = vld [vmem:[%s1303_s1 + $0x220] sm:$0xff]  ;;  %v101_v54 = vld [vmem:[%s1303_s1 + $0x218] sm:$0xff]  ;;  %v148_v57 = vld [vmem:[%s1303_s1 + $0x390] sm:$0xff] }
  0x29   :  { %766 = vmatpush3.msra.mxu1 %v144_v11  ;;  %732 = vmatprep.subr.mxu0 %v127_v12  ;;  %v134_v51 = vld [vmem:[%s1303_s1 + $0x320] sm:$0xff]  ;;  %v133_v55 = vld [vmem:[%s1303_s1 + $0x318] sm:$0xff]  ;;  %v100_v58 = vld [vmem:[%s1303_s1 + $0x210] sm:$0xff] }
  0x2a   :  { %767 = vmatprep.subr.mxu1 %v159_v13  ;;  %733 = vmatpush3.msra.mxu0 %v111_v14  ;;  %v132_v59 = vld [vmem:[%s1303_s1 + $0x310] sm:$0xff]  ;;  %v115_v60 = vld [vmem:[%s1303_s1 + $0x288] sm:$0xff]  ;;  %v114_v0 = vld [vmem:[%s1303_s1 + $0x280] sm:$0xff] }
  0x2b   :  { %768 = vmatpush3.msra.mxu1 %v143_v15  ;;  %734 = vmatprep.subr.mxu0 %v126_v16  ;;  %v147_v61 = vld [vmem:[%s1303_s1 + $0x388] sm:$0xff]  ;;  %v146_v1 = vld [vmem:[%s1303_s1 + $0x380] sm:$0xff]  ;;  %v33_v5 = vld [vmem:[%s1304_s0 + $0x38] sm:$0xff] }
  0x2c   :  { %769 = vmatprep.subr.mxu1 %v158_v17  ;;  %735 = vmatpush3.msra.mxu0 %v110_v18  ;;  %v99_v62 = vld [vmem:[%s1303_s1 + $0x208] sm:$0xff]  ;;  %v98_v2 = vld [vmem:[%s1303_s1 + $0x200] sm:$0xff]  ;;  %v32_v7 = vld [vmem:[%s1304_s0 + $0x30] sm:$0xff] }
  0x2d   :  { %770 = vmatpush3.msra.mxu1 %v142_v19  ;;  %736 = vmatprep.subr.mxu0 %v125_v20  ;;  %v131_v63 = vld [vmem:[%s1303_s1 + $0x308] sm:$0xff]  ;;  %v130_v4 = vld [vmem:[%s1303_s1 + $0x300] sm:$0xff] }
  0x2e   :  { %771 = vmatprep.subr.mxu1 %v157_v21  ;;  %737 = vmatpush3.msra.mxu0 %v109_v22  ;;  %v31_v3 = vld [vmem:[%s1304_s0 + $0x28] sm:$0xff]  ;;  %v30_v6 = vld [vmem:[%s1304_s0 + $0x20] sm:$0xff] }
  0x2f   :  { %772 = vmatpush3.msra.mxu1 %v141_v23  ;;  %738 = vmatprep.subr.mxu0 %v124_v24  ;;  %v459_v9 = vld [vmem:[%s1305_s3 + $0x8] sm:$0x3]  ;;  %v458_v10 = vld [vmem:[%s1305_s3] sm:$0xff] }
  0x30   :  { %773 = vmatprep.subr.mxu1 %v156_v25  ;;  %739 = vmatpush3.msra.mxu0 %v108_v26  ;;  %v649_v15 = vld [vmem:[%s1306_s2] ss:$0 sm:$0xff] }
  0x31   :  { %774 = vmatpush3.msra.mxu1 %v140_v27  ;;  %740 = vmatprep.subr.mxu0 %v123_v28 }
  0x32   :  { %775 = vmatprep.subr.mxu1 %v155_v29  ;;  %741 = vmatpush3.msra.mxu0 %v107_v30  ;;  %v547_v29 = vld [vmem:[%s1307_s5 + $0x8] sm:$0x3]  ;;  %v546_v30 = vld [vmem:[%s1307_s5] sm:$0xff] }
  0x33   :  { %776 = vmatpush3.msra.mxu1 %v139_v31  ;;  %742 = vmatprep.subr.mxu0 %v122_v32  ;;  %v652_v31 = vld [vmem:[%s1308_s4] ss:$0 sm:$0xff] }
  0x34   :  { %777 = vmatprep.subr.mxu1 %v154_v33  ;;  %743 = vmatpush3.msra.mxu0 %v106_v34 }
  0x35   :  { %778 = vmatpush3.msra.mxu1 %v138_v35  ;;  %744 = vmatprep.subr.mxu0 %v121_v36  ;;  %v655_v36 = vld [vmem:[%s1309_s6] ss:$0 sm:$0xff] }
  0x36   :  { %779 = vmatprep.subr.mxu1 %v153_v37  ;;  %745 = vmatpush3.msra.mxu0 %v105_v38 }
  0x37   :  { %780 = vmatpush3.msra.mxu1 %v137_v39  ;;  %746 = vmatprep.subr.mxu0 %v120_v40 }
  0x38   :  { %781 = vmatprep.subr.mxu1 %v152_v41  ;;  %747 = vmatpush3.msra.mxu0 %v104_v42 }
  0x39   :  { %782 = vmatpush3.msra.mxu1 %v136_v43  ;;  %748 = vmatprep.subr.mxu0 %v119_v44 }
  0x3a   :  { %783 = vmatprep.subr.mxu1 %v151_v45  ;;  %749 = vmatpush3.msra.mxu0 %v103_v46 }
  0x3b   :  { %784 = vmatpush3.msra.mxu1 %v135_v47  ;;  %750 = vmatprep.subr.mxu0 %v118_v48 }
  0x3c   :  { %785 = vmatprep.subr.mxu1 %v150_v49  ;;  %751 = vmatpush3.msra.mxu0 %v102_v50 }
  0x3d   :  { %786 = vmatpush3.msra.mxu1 %v134_v51  ;;  %752 = vmatprep.subr.mxu0 %v117_v52 }
  0x3e   :  { %787 = vmatprep.subr.mxu1 %v149_v53  ;;  %753 = vmatpush3.msra.mxu0 %v101_v54 }
  0x3f   :  { %788 = vmatpush3.msra.mxu1 %v133_v55  ;;  %754 = vmatprep.subr.mxu0 %v116_v56 }
  0x40   :  { %789 = vmatprep.subr.mxu1 %v148_v57  ;;  %755 = vmatpush3.msra.mxu0 %v100_v58 }
  0x41   :  { %790 = vmatpush3.msra.mxu1 %v132_v59  ;;  %756 = vmatprep.subr.mxu0 %v115_v60 }
  0x42   :  { %791 = vmatprep.subr.mxu1 %v147_v61  ;;  %757 = vmatpush3.msra.mxu0 %v99_v62 }
  0x43   :  { %792 = vmatpush3.msra.mxu1 %v131_v63  ;;  %758 = vmatprep.subr.mxu0 %v114_v0 }
  0x44   :  { %793 = vmatprep.subr.mxu1 %v146_v1  ;;  %759 = vmatpush3.msra.mxu0 %v98_v2 }
  0x45   :  { %381 = vmatprep.mubr.f32.mxu0 %v31_v3  ;;  %794 = vmatpush3.msra.mxu1 %v130_v4 }
  0x46   :  { %651 = vmatprep.mubr.msk.f32.mxu1 %vm169_vm1, %v33_v5  ;;  %382 = vmatmul.mubr.f32.vlgmr.msra.gmra.mxu0 %v30_v6 }
  0x47   :  { %452 = vmatmul.mubr.f32.vlgmr.msra.gmra.mxu1 %v32_v7  ;;  %804 = vmatprep.subr.mxu0 %v824_v8 }
  0x48   :  { %811 = vmatprep.subr.mxu1 %v824_v8  ;;  %805 = vmatpush3.msk.msra.mxu0 %vm471_vm2, %v459_v9 }
  0x49   :  { %806 = vmatprep.subr.mxu0 %v824_v8  ;;  %808 = vmatprep.mubr.msk.f32.mxu0 %vm825_vm3, %v824_v8 }
  0x4a   :  { %807 = vmatpush3.msra.mxu0 %v458_v10  ;;  %815 = vmatprep.mubr.msk.f32.mxu1 %vm825_vm3, %v824_v8 }
  0x4b   :  { %812 = vmatpush3.msk.msra.mxu1 %vm471_vm2, %v547_v29 }
  0x4c   :  { %813 = vmatprep.subr.mxu1 %v824_v8 }
  0x4d   :  { %814 = vmatpush3.msra.mxu1 %v546_v30 }
  0xe4   :  { %v690_v11 = vpop.f32.mrf.mxu0 }
  0xe6   :  { %v725_v12 = vpop.f32.mrf.mxu1  ;;  %v691_v13 = vpop.f32.mrf.mxu0 }
  0xe7   :  { %v692_v14 = vadd.f32 %v691_v13, %v690_v11 }
  0xe8   :  { %v726_v16 = vpop.f32.mrf.mxu1 }
  0xe9   :  { %v244_v17 = vadd.f32 %v692_v14, %v649_v15  ;;  %v727_v18 = vadd.f32 %v726_v16, %v725_v12 }
  0xeb   :  { %v314_v23 = vadd.f32 %v727_v18, %v244_v17 }
 0x106   :  { %v760_v19 = vpop.f32.mrf.mxu0 }
 0x107   :  { %v795_v20 = vpop.f32.mrf.mxu1 }
 0x108   :  { %v761_v21 = vpop.f32.mrf.mxu0 }
 0x109   :  { %v796_v22 = vpop.f32.mrf.mxu1  ;;  %v762_v24 = vadd.f32 %v761_v21, %v760_v19 }
 0x10a   :  { %v797_v26 = vadd.f32 %v796_v22, %v795_v20 }
 0x10b   :  { %v384_v25 = vadd.f32 %v762_v24, %v314_v23 }
 0x10d   :  { %v454_v27 = vadd.f32 %v797_v26, %v384_v25 }
 0x10f   :  { %v457_v28 = vmax.f32 %v454_v27, 0.0 }
 0x111   :  { %809 = vmatmul.mubr.msk.f32.vlgmr.msra.gmra.mxu0 %vm467_vm4, %v457_v28 }
 0x1d1   :  { %v541_v32 = vpop.f32.mrf.mxu0 }
 0x1d2   :  { %v542_v33 = vadd.f32 %v652_v31, %v541_v32 }
 0x1d3   :  { %v810_v34 = vpop.f32.mrf.mxu0 }
 0x1d4   :  { %v545_v35 = vmax.f32 %v542_v33, 0.0 }
 0x1d6   :  { %816 = vmatmul.mubr.msk.f32.vlgmr.msra.gmra.mxu1 %vm467_vm4, %v545_v35 }
 0x296   :  { %v627_v37 = vpop.f32.mrf.mxu1 }
 0x297   :  { %v628_v38 = vadd.f32 %v655_v36, %v627_v37 }
 0x298   :  { %v817_v39 = vpop.f32.mrf.mxu1 }
 0x299   :  { %v632_v40 = vsel %vm631_vm5, %v628_v38, -inf }
 0x29a   :  { %633 = vmax.xlane.f32.xlu0 %v632_v40 }
 0x323   :  { %v634_v41 = vpop.xlane.xlu0 %633 }
 0x324   :  { %v635_v42 = vsub.f32 %v628_v38, %v634_v41 }
 0x326   :  { %v636_v43 = vmul.f32 1.442695, %v635_v42 }
 0x328   :  { %820 = vpow2.f32 %v636_v43 }
 0x335   :  { %v821_v44 = vpop.eup %820 }
 0x336   :  { %v638_v45 = vsel %vm631_vm5, %v821_v44, 0.0 }
 0x337   :  { %639 = vadd.xlane.f32.xlu0 %v638_v45 }
 0x3c0   :  { %v640_v46 = vpop.xlane.xlu0 %639 }
 0x3c1   :  { %822 = vlog2.f32 %v640_v46 }
 0x3ce   :  { %v823_v47 = vpop.eup %822 }
 0x3cf   :  { %v642_v48 = vmul.f32 0.6931472, %v823_v47 }
 0x3d1   :  { %v643_v49 = vsub.f32 %v635_v42, %v642_v48 }
 0x3d3   :  { %644 = vst.msk [vmem:[%s1310_s7] sm:$0xff] %vm631_vm5, %v643_v49 }

</bundles_post_ra>
